<compile_context>
chip_gen: v7x
topology: tpu7x:2x2x1
jax: 0.10.0
libtpu: 0.0.40
codegen_flags: <defaults>
</compile_context>

<pallas_src>
import functools

import jax
import jax.numpy as jnp
import numpy as np
from jax.experimental import pallas as pl
from jax.experimental.pallas import tpu as pltpu

NEG_SLOPE = 0.2
EPS = 1e-8


def layer_epilogue_kernel(x_ref, noise_ref, nw_ref, scale_ref, shift_ref, o_ref):
    # All statistics in f32 regardless of input dtype.
    x = x_ref[...].astype(jnp.float32)          # (TN, C, S)
    noise = noise_ref[...].astype(jnp.float32)  # (TN, 1, S)
    nw = nw_ref[...].astype(jnp.float32)        # (C, 1)

    # --- ApplyNoise: x + weight.view(1,C,1,1,1) * noise ---
    x = x + nw[None, :, :] * noise

    # --- LeakyReLU(0.2): max(x, 0.2*x) ---
    x = jnp.maximum(x, NEG_SLOPE * x)

    # --- PixelNorm: normalize over channel axis ---
    x = x * jax.lax.rsqrt(jnp.mean(x * x, axis=1, keepdims=True) + EPS)

    # --- InstanceNorm statistics (single pass over spatial axis) ---
    mu = jnp.mean(x, axis=2, keepdims=True)          # (TN, C, 1)
    ex2 = jnp.mean(x * x, axis=2, keepdims=True)     # (TN, C, 1)
    var = ex2 - mu * mu
    inv_std = jax.lax.rsqrt(var + EPS)

    # --- Fused InstanceNorm + ApplyStyle: one FMA pass over the tile ---
    # scale_ref already holds (style_scale + 1).
    a = inv_std * scale_ref[...].astype(jnp.float32)          # (TN, C, 1)
    b = shift_ref[...].astype(jnp.float32) - mu * a           # (TN, C, 1)
    o_ref[...] = (x * a + b).astype(o_ref.dtype)


def _pick_samples_per_block(n, c, s, itemsize,
                            target_bytes=512 * 1024,
                            cap_bytes=4 * 1024 * 1024):
    """Smallest divisor of n whose x block reaches ~target_bytes (capped)."""
    per_sample = c * s * itemsize
    if per_sample >= target_bytes:
        return 1
    divisors = [d for d in range(1, n + 1) if n % d == 0]
    chosen = divisors[-1]
    for d in divisors:
        if d * per_sample >= target_bytes:
            chosen = d
            break
    if chosen * per_sample > cap_bytes:
        under = [d for d in divisors if d * per_sample <= cap_bytes]
        chosen = under[-1] if under else 1
    return chosen


def layer_epilogue(x, noise, dlatent, noise_w, fc_w, fc_b):
    """x: (N,C,D,H,W), noise: (N,1,D,H,W), dlatent: (N,L),
    noise_w: (C,), fc_w: (L, 2C) [pre-transposed FC weight], fc_b: (2C,)."""
    N, C, D, H, W = x.shape
    S = D * H * W
    L = dlatent.shape[1]

    x_flat = x.reshape(N, C, S)
    noise_flat = noise.reshape(N, 1, S)
    nw = noise_w.reshape(C, 1)

    # --- Hoisted ApplyStyle FC (use_wscale=True, gain=1.0, lrmul=1.0) ---
    w_mul = 1.0 / float(np.sqrt(L))
    style = (dlatent.astype(jnp.float32) @ fc_w.astype(jnp.float32)) * w_mul \
        + fc_b.astype(jnp.float32)[None, :]                 # (N, 2C)
    scale_p1 = (style[:, :C] + 1.0).reshape(N, C, 1)        # (N, C, 1)
    shift = style[:, C:].reshape(N, C, 1)                   # (N, C, 1)

    itemsize = jnp.dtype(x.dtype).itemsize
    TN = _pick_samples_per_block(N, C, S, itemsize)
    grid = (N // TN,)

    # VMEM budget: double-buffered in/out x blocks + small side inputs.
    blk_bytes = TN * C * S * itemsize
    vmem_need = 2 * (2 * blk_bytes + TN * S * itemsize + 2 * TN * C * 4) + C * 4
    vmem_limit = int(min(100 * 1024 * 1024,
                         max(32 * 1024 * 1024, 2 * vmem_need)))

    cost = pl.CostEstimate(
        flops=int(10 * N * C * S),
        transcendentals=int(N * S + N * C),
        bytes_accessed=int(2 * N * C * S * itemsize + N * S * itemsize),
    )

    out = pl.pallas_call(
        layer_epilogue_kernel,
        out_shape=jax.ShapeDtypeStruct((N, C, S), x.dtype),
        grid_spec=pltpu.PrefetchScalarGridSpec(
            num_scalar_prefetch=0,
            grid=grid,
            in_specs=[
                pl.BlockSpec((TN, C, S), lambda n: (n, 0, 0)),   # x
                pl.BlockSpec((TN, 1, S), lambda n: (n, 0, 0)),   # noise
                pl.BlockSpec((C, 1), lambda n: (0, 0)),          # noise weight
                pl.BlockSpec((TN, C, 1), lambda n: (n, 0, 0)),   # scale + 1
                pl.BlockSpec((TN, C, 1), lambda n: (n, 0, 0)),   # shift
            ],
            out_specs=pl.BlockSpec((TN, C, S), lambda n: (n, 0, 0)),
        ),
        compiler_params=pltpu.CompilerParams(
            dimension_semantics=("parallel",),
            vmem_limit_bytes=vmem_limit),
        cost_estimate=cost,
    )(x_flat, noise_flat, nw, scale_p1, shift)

    return out.reshape(N, C, D, H, W)


def layer_epilogue_ref(x, noise, dlatent, noise_w, fc_w, fc_b):
    """Pure-JAX reference mirroring the PyTorch forward exactly."""
    C = x.shape[1]
    w_mul = 1.0 / float(np.sqrt(dlatent.shape[1]))
    x = x + noise_w.reshape(1, -1, 1, 1, 1) * noise
    x = jnp.where(x > 0, x, NEG_SLOPE * x)
    x = x * jax.lax.rsqrt(jnp.mean(x * x, axis=1, keepdims=True) + EPS)
    x = x - jnp.mean(x, axis=(2, 3, 4), keepdims=True)
    x = x * jax.lax.rsqrt(jnp.mean(x * x, axis=(2, 3, 4), keepdims=True) + EPS)
    style = dlatent @ fc_w * w_mul + fc_b[None, :]        # (N, 2C)
    scale = style[:, :C].reshape(-1, C, 1, 1, 1)
    shift = style[:, C:].reshape(-1, C, 1, 1, 1)
    return x * (scale + 1.0) + shift


if __name__ == "__main__":
    # Small shapes consistent with a 3D-GAN layer epilogue.
    N, C, D, H, W = 2, 8, 8, 8, 8          # spatial flattened S = 512
    L = 32                                  # dlatent size

    key = jax.random.PRNGKey(0)
    k_x, k_n, k_lat, k_nw, k_w, k_b = jax.random.split(key, 6)

    x = jax.random.normal(k_x, (N, C, D, H, W), dtype=jnp.float32)
    noise = jax.random.normal(k_n, (N, 1, D, H, W), dtype=jnp.float32)
    dlatent = jax.random.normal(k_lat, (N, L), dtype=jnp.float32)

    # Synthetic deterministic parameters (module __init__ shapes).
    # nn.Parameter(torch.zeros(channels)) -> nonzero here so the path is exercised.
    noise_w = 0.1 * jax.random.normal(k_nw, (C,), dtype=jnp.float32)
    fc_w = jax.random.normal(k_w, (L, 2 * C), dtype=jnp.float32)   # FC weight^T
    fc_b = 0.1 * jax.random.normal(k_b, (2 * C,), dtype=jnp.float32)

    out = layer_epilogue(x, noise, dlatent, noise_w, fc_w, fc_b)
    out = jax.block_until_ready(out)

    ref = layer_epilogue_ref(x, noise, dlatent, noise_w, fc_w, fc_b)
    np.testing.assert_allclose(np.asarray(out), np.asarray(ref),
                               rtol=1e-5, atol=1e-5)
    print("KERNEL_OK")
</pallas_src>

<mosaic_0001>
module attributes {stable_mosaic.version = 11 : i64} {
  func.func @layer_epilogue_kernel(%arg0: i32, %arg1: memref<2x8x512xf32, #tpu.memory_space<vmem>>, %arg2: memref<2x1x512xf32, #tpu.memory_space<vmem>>, %arg3: memref<8x1xf32, #tpu.memory_space<vmem>>, %arg4: memref<2x8x1xf32, #tpu.memory_space<vmem>>, %arg5: memref<2x8x1xf32, #tpu.memory_space<vmem>>, %arg6: memref<2x8x512xf32, #tpu.memory_space<vmem>>) attributes {dimension_semantics = [#tpu.dimension_semantics<parallel>], iteration_bounds = array<i64: 1>, scalar_prefetch = 0 : i64, scratch_operands = 0 : i64, tpu.core_type = #tpu.core_type<tc>, window_params = [{transform_indices = @transform_0, window_bounds = array<i64: 2, 8, 512>}, {transform_indices = @transform_1, window_bounds = array<i64: 2, 1, 512>}, {pipeline_mode = #tpu.pipeline_mode<synchronous>, transform_indices = @transform_2, window_bounds = array<i64: 8, 1>}, {transform_indices = @transform_3, window_bounds = array<i64: 2, 8, 1>}, {transform_indices = @transform_4, window_bounds = array<i64: 2, 8, 1>}, {transform_indices = @transform_5, window_bounds = array<i64: 2, 8, 512>}]} {
    %c0 = arith.constant 0 : index
    %c0_0 = arith.constant 0 : index
    %c0_1 = arith.constant 0 : index
    %0 = vector.load %arg1[%c0, %c0_0, %c0_1] : memref<2x8x512xf32, #tpu.memory_space<vmem>>, vector<2x8x512xf32>
    %c0_2 = arith.constant 0 : index
    %c0_3 = arith.constant 0 : index
    %c0_4 = arith.constant 0 : index
    %1 = vector.load %arg2[%c0_2, %c0_3, %c0_4] : memref<2x1x512xf32, #tpu.memory_space<vmem>>, vector<2x1x512xf32>
    %c0_5 = arith.constant 0 : index
    %c0_6 = arith.constant 0 : index
    %2 = vector.load %arg3[%c0_5, %c0_6] : memref<8x1xf32, #tpu.memory_space<vmem>>, vector<8x1xf32>
    %3 = vector.shape_cast %2 : vector<8x1xf32> to vector<1x8x1xf32>
    %4 = vector.broadcast %3 : vector<1x8x1xf32> to vector<2x8x512xf32>
    %5 = vector.broadcast %1 : vector<2x1x512xf32> to vector<2x8x512xf32>
    %6 = arith.mulf %4, %5 : vector<2x8x512xf32>
    %7 = arith.addf %0, %6 : vector<2x8x512xf32>
    %cst = arith.constant 2.000000e-01 : f32
    %8 = vector.broadcast %cst : f32 to vector<2x8x512xf32>
    %9 = arith.mulf %8, %7 : vector<2x8x512xf32>
    %10 = arith.maximumf %7, %9 : vector<2x8x512xf32>
    %11 = arith.mulf %10, %10 : vector<2x8x512xf32>
    %cst_7 = arith.constant dense<0.000000e+00> : vector<2x512xf32>
    %12 = vector.multi_reduction <add>, %11, %cst_7 [1] : vector<2x8x512xf32> to vector<2x512xf32>
    %13 = vector.shape_cast %12 : vector<2x512xf32> to vector<2x1x512xf32>
    %cst_8 = arith.constant 8.000000e+00 : f32
    %14 = vector.broadcast %cst_8 : f32 to vector<2x1x512xf32>
    %15 = arith.divf %13, %14 : vector<2x1x512xf32>
    %cst_9 = arith.constant 9.99999993E-9 : f32
    %16 = vector.broadcast %cst_9 : f32 to vector<2x1x512xf32>
    %17 = arith.addf %15, %16 : vector<2x1x512xf32>
    %18 = math.rsqrt %17 : vector<2x1x512xf32>
    %19 = vector.broadcast %18 : vector<2x1x512xf32> to vector<2x8x512xf32>
    %20 = arith.mulf %10, %19 : vector<2x8x512xf32>
    %cst_10 = arith.constant dense<0.000000e+00> : vector<2x8xf32>
    %21 = vector.multi_reduction <add>, %20, %cst_10 [2] : vector<2x8x512xf32> to vector<2x8xf32>
    %22 = vector.shape_cast %21 : vector<2x8xf32> to vector<2x8x1xf32>
    %cst_11 = arith.constant 5.120000e+02 : f32
    %23 = vector.broadcast %cst_11 : f32 to vector<2x8x1xf32>
    %24 = arith.divf %22, %23 : vector<2x8x1xf32>
    %25 = arith.mulf %20, %20 : vector<2x8x512xf32>
    %cst_12 = arith.constant dense<0.000000e+00> : vector<2x8xf32>
    %26 = vector.multi_reduction <add>, %25, %cst_12 [2] : vector<2x8x512xf32> to vector<2x8xf32>
    %27 = vector.shape_cast %26 : vector<2x8xf32> to vector<2x8x1xf32>
    %cst_13 = arith.constant 5.120000e+02 : f32
    %28 = vector.broadcast %cst_13 : f32 to vector<2x8x1xf32>
    %29 = arith.divf %27, %28 : vector<2x8x1xf32>
    %30 = arith.mulf %24, %24 : vector<2x8x1xf32>
    %31 = arith.subf %29, %30 : vector<2x8x1xf32>
    %cst_14 = arith.constant 9.99999993E-9 : f32
    %32 = vector.broadcast %cst_14 : f32 to vector<2x8x1xf32>
    %33 = arith.addf %31, %32 : vector<2x8x1xf32>
    %34 = math.rsqrt %33 : vector<2x8x1xf32>
    %c0_15 = arith.constant 0 : index
    %c0_16 = arith.constant 0 : index
    %c0_17 = arith.constant 0 : index
    %35 = vector.load %arg4[%c0_15, %c0_16, %c0_17] : memref<2x8x1xf32, #tpu.memory_space<vmem>>, vector<2x8x1xf32>
    %36 = arith.mulf %34, %35 : vector<2x8x1xf32>
    %c0_18 = arith.constant 0 : index
    %c0_19 = arith.constant 0 : index
    %c0_20 = arith.constant 0 : index
    %37 = vector.load %arg5[%c0_18, %c0_19, %c0_20] : memref<2x8x1xf32, #tpu.memory_space<vmem>>, vector<2x8x1xf32>
    %38 = arith.mulf %24, %36 : vector<2x8x1xf32>
    %39 = arith.subf %37, %38 : vector<2x8x1xf32>
    %40 = vector.broadcast %36 : vector<2x8x1xf32> to vector<2x8x512xf32>
    %41 = arith.mulf %20, %40 : vector<2x8x512xf32>
    %42 = vector.broadcast %39 : vector<2x8x1xf32> to vector<2x8x512xf32>
    %43 = arith.addf %41, %42 : vector<2x8x512xf32>
    %c0_21 = arith.constant 0 : index
    %c0_22 = arith.constant 0 : index
    %c0_23 = arith.constant 0 : index
    %44 = vector.load %arg6[%c0_21, %c0_22, %c0_23] : memref<2x8x512xf32, #tpu.memory_space<vmem>>, vector<2x8x512xf32>
    tpu.vector_store %arg6[%c0_21, %c0_22, %c0_23], %43 {strides = array<i32>} : memref<2x8x512xf32, #tpu.memory_space<vmem>>, vector<2x8x512xf32>,
    return
  }
  func.func @transform_0(%arg0: i32) -> (i32, i32, i32) {
    %c0_i32 = arith.constant 0 : i32
    %c0_i32_0 = arith.constant 0 : i32
    %c0_i32_1 = arith.constant 0 : i32
    return %arg0, %c0_i32, %c0_i32_0 : i32, i32, i32
  }
  func.func @transform_1(%arg0: i32) -> (i32, i32, i32) {
    %c0_i32 = arith.constant 0 : i32
    %c0_i32_0 = arith.constant 0 : i32
    %c0_i32_1 = arith.constant 0 : i32
    return %arg0, %c0_i32, %c0_i32_0 : i32, i32, i32
  }
  func.func @transform_2(%arg0: i32) -> (i32, i32) {
    %c0_i32 = arith.constant 0 : i32
    %c0_i32_0 = arith.constant 0 : i32
    %c0_i32_1 = arith.constant 0 : i32
    return %c0_i32, %c0_i32_0 : i32, i32
  }
  func.func @transform_3(%arg0: i32) -> (i32, i32, i32) {
    %c0_i32 = arith.constant 0 : i32
    %c0_i32_0 = arith.constant 0 : i32
    %c0_i32_1 = arith.constant 0 : i32
    return %arg0, %c0_i32, %c0_i32_0 : i32, i32, i32
  }
  func.func @transform_4(%arg0: i32) -> (i32, i32, i32) {
    %c0_i32 = arith.constant 0 : i32
    %c0_i32_0 = arith.constant 0 : i32
    %c0_i32_1 = arith.constant 0 : i32
    return %arg0, %c0_i32, %c0_i32_0 : i32, i32, i32
  }
  func.func @transform_5(%arg0: i32) -> (i32, i32, i32) {
    %c0_i32 = arith.constant 0 : i32
    %c0_i32_0 = arith.constant 0 : i32
    %c0_i32_1 = arith.constant 0 : i32
    return %arg0, %c0_i32, %c0_i32_0 : i32, i32, i32
  }
}

</mosaic_0001>

<bundles_post_ra>
// kernel: tpu_custom_call.1
= control target key start
LH: loop header
LB: loop body
LE: loop exit
PB: predicated region body
PF: predicated region fallthrough
CT: control target
= control target key end

     0   :  { %10 = vsyncpa [#allocation3], 0  ;;  %s557_s0 = inlined_call_operand.hbm [shape: f32[2,8,512], index: 0, kind: input, shape index: {}]   ;;  %s558_s1 = inlined_call_operand.vmem [shape: f32[2,1,512], index: 1, kind: input, shape index: {}]   ;;  %s559_s2 = inlined_call_operand.vmem [shape: f32[8,1], index: 2, kind: input, shape index: {}]   ;;  %s560_s3 = inlined_call_operand.vmem [shape: f32[2,8,1], index: 3, kind: input, shape index: {}]   ;;  %s561_s4 = inlined_call_operand.vmem [shape: f32[2,8,1], index: 4, kind: input, shape index: {}]   ;;  %s562_s5 = inlined_call_operand.hbm [shape: f32[2,8,512], index: 5, kind: output, shape index: {}]  }
   0x1   :  { %11 = vsyncpa [#allocation4], 0  ;;  %s401_s18 = smov [#allocation2]   ;;  %s353_s22 = scalar_lea.hbm %s557_s0, 1024 }
   0x2   :  { %s17_s19 = sshll.u32 %s401_s18, 4  ;;  %p354_p0 = scmp.ne.s32.totalorder %s557_s0, %s353_s22  ;;  %s18_s19 = int_to_ptr.vmem [resolvable:$true] %s17_s19 }
   0x3   :  { %p357_p1 = scmp.lt.u32.totalorder %s353_s22, %s557_s0 }
   0x5   :  { %p359_p2 = pnand %p357_p1, %p354_p0 }
   0x7   :  { %362 = shalt.err (!%p359_p2)
}
   0x8   :  { %s363_s27 = scalar_lea.vmem %s18_s19, 1024  ;;  %p368_p4 = scmp.lt.s32.totalorder %s18_s19, %s18_s19 }
   0x9   :  { %p364_p3 = scmp.ne.s32.totalorder %s18_s19, %s363_s27  ;;  %p369_p5 = scmp.lt.s32.totalorder %s363_s27, %s363_s27 }
   0xb   :  { %p370_p6 = por %p369_p5, %p368_p4 }
   0xd   :  { %p371_p7 = pnand %p370_p6, %p364_p3 }
   0xf   :  { %374 = shalt.err (!%p371_p7)
}
  0x10   :  { %s402_s28 = smov 512   ;;  %s403_s29 = smov 32  }
  0x11   :  { %23 = dma.hbm_to_vmem [thread:$0]  %s557_s0, 1024, %s18_s19, [#allocation3], %s402_s28, %s402_s28, %s403_s29  }
  0x12   :  { %397 = dma.done.wait [#allocation3], 1024  }
  0x13   :  { %398 = vsyncadd [#allocation3], 4294966272  ;;  %v404_v0 = vmov 0   ;;  %v45_v1 = vld [vmem:[%s559_s2] sm:$0xff]  ;;  %v53_v2 = vlaneseq  ;;  %v40_v19 = vld [vmem:[#allocation2 + $0x28] sm:$0xff] }
  0x14   :  { %331 = vset.pattern.permute.xlu0 %v404_v0  ;;  %332 = vset.pattern.permute.xlu1 %v404_v0  ;;  %v44_v8 = vld [vmem:[%s558_s1 + $0x4] sm:$0xf]  ;;  %v43_v9 = vld [vmem:[%s558_s1] sm:$0xf]  ;;  %v41_v21 = vld [vmem:[#allocation2 + $0x30] sm:$0xff] }
  0x15   :  { %48 = vperm.xlu0 %331, %v45_v1   ;;  %v54_v3 = vshrl.u32 %v53_v2, 7  ;;  %v39_v18 = vld [vmem:[#allocation2 + $0x20] sm:$0xff]  ;;  %v42_v22 = vld [vmem:[#allocation2 + $0x38] sm:$0xff]  ;;  %v36_v28 = vld [vmem:[#allocation2 + $0x8] sm:$0xff] }
  0x16   :  { %v35_v23 = vld [vmem:[#allocation2] sm:$0xff]  ;;  %v37_v29 = vld [vmem:[#allocation2 + $0x10] sm:$0xff]  ;;  %v38_v30 = vld [vmem:[#allocation2 + $0x18] sm:$0xff] }
  0x17   :  { %v55_v4 = vsub.s32 0, %v54_v3  ;;  %v59_v5 = vsub.s32 1, %v54_v3  ;;  %v63_v6 = vsub.s32 2, %v54_v3  ;;  %v67_v7 = vsub.s32 3, %v54_v3 }
  0x19   :  { %v72_v10 = vrot.slane %v44_v8, %v55_v4  ;;  %v76_v11 = vrot.slane %v44_v8, %v59_v5  ;;  %v80_v12 = vrot.slane %v44_v8, %v63_v6  ;;  %v84_v13 = vrot.slane %v44_v8, %v67_v7 }
  0x1a   :  { %v56_v14 = vrot.slane %v43_v9, %v55_v4  ;;  %v60_v15 = vrot.slane %v43_v9, %v59_v5  ;;  %v64_v16 = vrot.slane %v43_v9, %v63_v6  ;;  %v68_v17 = vrot.slane %v43_v9, %v67_v7 }
  0x94   :  { %v49_v20 = vpop.permute.xlu0 %48 }
  0x95   :  { %v97_v24 = vmul.f32 %v72_v10, %v49_v20  ;;  %v98_v25 = vmul.f32 %v76_v11, %v49_v20  ;;  %v99_v26 = vmul.f32 %v80_v12, %v49_v20  ;;  %v100_v27 = vmul.f32 %v84_v13, %v49_v20 }
  0x96   :  { %v93_v31 = vmul.f32 %v56_v14, %v49_v20  ;;  %v94_v32 = vmul.f32 %v60_v15, %v49_v20  ;;  %v95_v33 = vmul.f32 %v64_v16, %v49_v20  ;;  %v96_v34 = vmul.f32 %v68_v17, %v49_v20 }
  0x97   :  { %v105_v35 = vadd.f32 %v97_v24, %v39_v18  ;;  %v106_v36 = vadd.f32 %v98_v25, %v40_v19  ;;  %v107_v37 = vadd.f32 %v99_v26, %v41_v21  ;;  %v108_v38 = vadd.f32 %v100_v27, %v42_v22 }
  0x98   :  { %v101_v39 = vadd.f32 %v93_v31, %v35_v23  ;;  %v102_v40 = vadd.f32 %v94_v32, %v36_v28  ;;  %v103_v41 = vadd.f32 %v95_v33, %v37_v29  ;;  %v104_v42 = vadd.f32 %v96_v34, %v38_v30 }
  0x99   :  { %v113_v43 = vmul.f32 0.2, %v105_v35  ;;  %v114_v44 = vmul.f32 0.2, %v106_v36  ;;  %v115_v45 = vmul.f32 0.2, %v107_v37 }
  0x9a   :  { %v116_v46 = vmul.f32 0.2, %v108_v38  ;;  %v109_v47 = vmul.f32 0.2, %v101_v39  ;;  %v110_v48 = vmul.f32 0.2, %v102_v40 }
  0x9b   :  { %v460_v49 = vmax.f32 %v105_v35, %v113_v43  ;;  %v462_v50 = vmax.f32 %v106_v36, %v114_v44  ;;  %v464_v51 = vmax.f32 %v107_v37, %v115_v45  ;;  %v111_v52 = vmul.f32 0.2, %v103_v41 }
  0x9c   :  { %v466_v53 = vmax.f32 %v108_v38, %v116_v46  ;;  %v112_v54 = vmul.f32 0.2, %v104_v42  ;;  %v468_v55 = vmax.f32 %v101_v39, %v109_v47  ;;  %v470_v56 = vmax.f32 %v102_v40, %v110_v48 }
  0x9d   :  { %v129_v57 = vmul.f32 %v460_v49, %v460_v49  ;;  %v130_v58 = vmul.f32 %v462_v50, %v462_v50  ;;  %v131_v59 = vmul.f32 %v464_v51, %v464_v51  ;;  %v478_v60 = vmax.f32 %v103_v41, %v111_v52 }
  0x9e   :  { %v132_v61 = vmul.f32 %v466_v53, %v466_v53  ;;  %v482_v62 = vmax.f32 %v104_v42, %v112_v54  ;;  %v125_v63 = vmul.f32 %v468_v55, %v468_v55  ;;  %v126_v0 = vmul.f32 %v470_v56, %v470_v56 }
  0x9f   :  { %v157_v1 = vrot.slane %v129_v57, 4  ;;  %v163_v2 = vrot.slane %v130_v58, 4  ;;  %v169_v3 = vrot.slane %v131_v59, 4  ;;  %v127_v4 = vmul.f32 %v478_v60, %v478_v60 }
  0xa0   :  { %v175_v5 = vrot.slane %v132_v61, 4  ;;  %v128_v6 = vmul.f32 %v482_v62, %v482_v62  ;;  %v133_v7 = vrot.slane %v125_v63, 4  ;;  %v139_v8 = vrot.slane %v126_v0, 4 }
  0xa1   :  { %v158_v9 = vadd.f32 %v157_v1, %v129_v57  ;;  %v164_v10 = vadd.f32 %v163_v2, %v130_v58  ;;  %v170_v11 = vadd.f32 %v169_v3, %v131_v59  ;;  %v145_v12 = vrot.slane %v127_v4, 4 }
  0xa2   :  { %v176_v13 = vadd.f32 %v175_v5, %v132_v61  ;;  %v134_v14 = vadd.f32 %v133_v7, %v125_v63  ;;  %v140_v15 = vadd.f32 %v139_v8, %v126_v0  ;;  %v151_v16 = vrot.slane %v128_v6, 4 }
  0xa3   :  { %v159_v17 = vrot.slane %v158_v9, 2  ;;  %v165_v18 = vrot.slane %v164_v10, 2  ;;  %v171_v19 = vrot.slane %v170_v11, 2  ;;  %v146_v20 = vadd.f32 %v145_v12, %v127_v4 }
  0xa4   :  { %v177_v21 = vrot.slane %v176_v13, 2  ;;  %v135_v22 = vrot.slane %v134_v14, 2  ;;  %v141_v23 = vrot.slane %v140_v15, 2  ;;  %v152_v24 = vadd.f32 %v151_v16, %v128_v6 }
  0xa5   :  { %v160_v25 = vadd.f32 %v159_v17, %v158_v9  ;;  %v166_v26 = vadd.f32 %v165_v18, %v164_v10  ;;  %v172_v27 = vadd.f32 %v171_v19, %v170_v11  ;;  %v147_v28 = vrot.slane %v146_v20, 2 }
  0xa6   :  { %v178_v29 = vadd.f32 %v177_v21, %v176_v13  ;;  %v136_v30 = vadd.f32 %v135_v22, %v134_v14  ;;  %v142_v31 = vadd.f32 %v141_v23, %v140_v15  ;;  %v153_v32 = vrot.slane %v152_v24, 2 }
  0xa7   :  { %v161_v33 = vrot.slane %v160_v25, 1  ;;  %v167_v34 = vrot.slane %v166_v26, 1  ;;  %v173_v35 = vrot.slane %v172_v27, 1  ;;  %v148_v36 = vadd.f32 %v147_v28, %v146_v20 }
  0xa8   :  { %v179_v37 = vrot.slane %v178_v29, 1  ;;  %v137_v38 = vrot.slane %v136_v30, 1  ;;  %v143_v39 = vrot.slane %v142_v31, 1  ;;  %v154_v40 = vadd.f32 %v153_v32, %v152_v24 }
  0xa9   :  { %v162_v41 = vadd.f32 %v161_v33, %v160_v25  ;;  %v168_v42 = vadd.f32 %v167_v34, %v166_v26  ;;  %v174_v43 = vadd.f32 %v173_v35, %v172_v27  ;;  %v149_v44 = vrot.slane %v148_v36, 1 }
  0xaa   :  { %v180_v45 = vadd.f32 %v179_v37, %v178_v29  ;;  %v138_v46 = vadd.f32 %v137_v38, %v136_v30  ;;  %v144_v47 = vadd.f32 %v143_v39, %v142_v31  ;;  %v155_v48 = vrot.slane %v154_v40, 1 }
  0xab   :  { %v186_v52 = vmul.f32 0.125, %v162_v41  ;;  %v187_v54 = vmul.f32 0.125, %v168_v42  ;;  %v188_v57 = vmul.f32 0.125, %v174_v43  ;;  %v150_v58 = vadd.f32 %v149_v44, %v148_v36 }
  0xac   :  { %v189_v59 = vmul.f32 0.125, %v180_v45  ;;  %v156_v61 = vadd.f32 %v155_v48, %v154_v40  ;;  %v182_v63 = vmul.f32 0.125, %v138_v46  ;;  %v183_v0 = vmul.f32 0.125, %v144_v47 }
  0xad   :  { %v194_v1 = vadd.f32 1e-08, %v186_v52  ;;  %v195_v2 = vadd.f32 1e-08, %v187_v54  ;;  %v196_v3 = vadd.f32 1e-08, %v188_v57 }
  0xae   :  { %v197_v4 = vadd.f32 1e-08, %v189_v59  ;;  %v184_v5 = vmul.f32 0.125, %v150_v58  ;;  %v185_v6 = vmul.f32 0.125, %v156_v61  ;;  %v190_v7 = vadd.f32 1e-08, %v182_v63 }
  0xaf   :  { %333 = vrsqrt.f32 %v194_v1  ;;  %v191_v8 = vadd.f32 1e-08, %v183_v0  ;;  %v255_v59 = vld [vmem:[%s560_s3] sm:$0xff]  ;;  %v256_v0 = vld [vmem:[%s560_s3 + $0x8] sm:$0xff]  ;;  %s405_s3 = smov [#allocation5]  }
  0xb0   :  { %335 = vrsqrt.f32 %v195_v2  ;;  %v192_v9 = vadd.f32 1e-08, %v184_v5  ;;  %v193_v10 = vadd.f32 1e-08, %v185_v6  ;;  %v259_v5 = vld [vmem:[%s561_s4] sm:$0xff]  ;;  %s314_s18 = sshll.u32 %s405_s3, 4  ;;  %s315_s18 = int_to_ptr.vmem [resolvable:$true] %s314_s18 }
  0xb1   :  { %337 = vrsqrt.f32 %v196_v3  ;;  %p380_p9 = scmp.lt.s32.totalorder %s315_s18, %s315_s18 }
  0xb2   :  { %339 = vrsqrt.f32 %v197_v4  ;;  %v260_v4 = vld [vmem:[%s561_s4 + $0x8] sm:$0xff]  ;;  %s375_s4 = scalar_lea.vmem %s315_s18, 1024 }
  0xb3   :  { %341 = vrsqrt.f32 %v190_v7  ;;  %p376_p8 = scmp.ne.s32.totalorder %s315_s18, %s375_s4  ;;  %p381_p10 = scmp.lt.s32.totalorder %s375_s4, %s375_s4 }
  0xb4   :  { %343 = vrsqrt.f32 %v191_v8 }
  0xb5   :  { %345 = vrsqrt.f32 %v192_v9  ;;  %p382_p11 = por %p381_p10, %p380_p9 }
  0xb6   :  { %347 = vrsqrt.f32 %v193_v10 }
  0xb7   :  { %p383_p12 = pnand %p382_p11, %p376_p8 }
  0xb9   :  { %v334_v11 = vpop.eup %333 }
  0xba   :  { %v336_v12 = vpop.eup %335  ;;  %v493_v13 = vmul.f32 %v334_v11, %v460_v49 }
  0xbb   :  { %v338_v14 = vpop.eup %337  ;;  %v496_v15 = vmul.f32 %v336_v12, %v462_v50 }
  0xbc   :  { %v340_v16 = vpop.eup %339  ;;  %v499_v18 = vmul.f32 %v338_v14, %v464_v51  ;;  %v231_v49 = vmul.f32 %v493_v13, %v493_v13 }
  0xbd   :  { %v342_v17 = vpop.eup %341  ;;  %v219_v19 = vadd.f32 %v496_v15, %v493_v13  ;;  %v509_v23 = vmul.f32 %v340_v16, %v466_v53  ;;  %v232_v51 = vmul.f32 %v496_v15, %v496_v15 }
  0xbe   :  { %v344_v20 = vpop.eup %343  ;;  %v504_v21 = vmul.f32 %v342_v17, %v468_v55 }
  0xbf   :  { %v346_v22 = vpop.eup %345  ;;  %v220_v50 = vadd.f32 %v219_v19, %v499_v18  ;;  %v207_v24 = vmul.f32 %v344_v20, %v470_v56  ;;  %v240_v32 = vadd.f32 %v232_v51, %v231_v49 }
  0xc0   :  { %v348_v25 = vpop.eup %347  ;;  %v208_v26 = vmul.f32 %v346_v22, %v478_v60  ;;  %v227_v55 = vmul.f32 %v504_v21, %v504_v21  ;;  %v233_v60 = vmul.f32 %v499_v18, %v499_v18 }
  0xc1   :  { %v221_v27 = vadd.f32 %v220_v50, %v509_v23  ;;  %v209_v28 = vmul.f32 %v348_v25, %v482_v62  ;;  %v214_v53 = vadd.f32 %v207_v24, %v504_v21  ;;  %v228_v29 = vmul.f32 %v207_v24, %v207_v24 }
  0xc2   :  { %v229_v31 = vmul.f32 %v208_v26, %v208_v26  ;;  %v241_v37 = vadd.f32 %v240_v32, %v233_v60  ;;  %v234_v62 = vmul.f32 %v509_v23, %v509_v23 }
  0xc3   :  { %222 = vadd.xlane.f32.xlu1 %v221_v27  ;;  %v215_v30 = vadd.f32 %v214_v53, %v208_v26  ;;  %v235_v56 = vadd.f32 %v228_v29, %v227_v55  ;;  %v230_v34 = vmul.f32 %v209_v28, %v209_v28 }
  0xc4   :  { %v242_v38 = vadd.f32 %v241_v37, %v234_v62 }
  0xc5   :  { %v216_v33 = vadd.f32 %v215_v30, %v209_v28  ;;  %v236_v35 = vadd.f32 %v235_v56, %v229_v31 }
  0xc7   :  { %217 = vadd.xlane.f32.xlu0 %v216_v33  ;;  %v237_v36 = vadd.f32 %v236_v35, %v230_v34 }
  0xc9   :  { %238 = vadd.xlane.f32.xlu1 %v237_v36 }
  0xcd   :  { %243 = vadd.xlane.f32.xlu1 %v242_v38 }
 0x150   :  { %v223_v39 = vpop.xlane.xlu1 %222 }
 0x151   :  { %v226_v43 = vmul.f32 0.001953125, %v223_v39 }
 0x153   :  { %v248_v48 = vmul.f32 %v226_v43, %v226_v43 }
 0x154   :  { %v218_v40 = vpop.xlane.xlu0 %217 }
 0x155   :  { %v225_v41 = vmul.f32 0.001953125, %v218_v40 }
 0x156   :  { %v239_v42 = vpop.xlane.xlu1 %238 }
 0x157   :  { %v247_v44 = vmul.f32 %v225_v41, %v225_v41  ;;  %v245_v45 = vmul.f32 0.001953125, %v239_v42 }
 0x159   :  { %v249_v46 = vsub.f32 %v245_v45, %v247_v44 }
 0x15a   :  { %v244_v47 = vpop.xlane.xlu1 %243 }
 0x15b   :  { %v251_v52 = vadd.f32 1e-08, %v249_v46  ;;  %v246_v54 = vmul.f32 0.001953125, %v244_v47 }
 0x15d   :  { %349 = vrsqrt.f32 %v251_v52  ;;  %v250_v57 = vsub.f32 %v246_v54, %v248_v48 }
 0x15f   :  { %v252_v58 = vadd.f32 1e-08, %v250_v57 }
 0x161   :  { %351 = vrsqrt.f32 %v252_v58 }
 0x167   :  { %v350_v61 = vpop.eup %349 }
 0x168   :  { %v257_v63 = vmul.f32 %v350_v61, %v255_v59 }
 0x16a   :  { %267 = vperm.xlu1 %332, %v257_v63   ;;  %v261_v3 = vmul.f32 %v257_v63, %v225_v41 }
 0x16b   :  { %v352_v1 = vpop.eup %351 }
 0x16c   :  { %v258_v2 = vmul.f32 %v352_v1, %v256_v0  ;;  %v263_v8 = vsub.f32 %v259_v5, %v261_v3 }
 0x16e   :  { %272 = vperm.xlu1 %332, %v258_v2   ;;  %v262_v6 = vmul.f32 %v258_v2, %v226_v43 }
 0x170   :  { %v264_v7 = vsub.f32 %v260_v4, %v262_v6 }
 0x172   :  { %290 = vperm.xlu0 %331, %v264_v7   ;;  %285 = vperm.xlu1 %332, %v263_v8  }
 0x1e9   :  { %v268_v9 = vpop.permute.xlu1 %267 }
 0x1ea   :  { %v275_v11 = vmul.f32 %v268_v9, %v504_v21  ;;  %v276_v12 = vmul.f32 %v268_v9, %v207_v24  ;;  %v277_v14 = vmul.f32 %v268_v9, %v208_v26  ;;  %v278_v16 = vmul.f32 %v268_v9, %v209_v28 }
 0x1ed   :  { %v273_v10 = vpop.permute.xlu1 %272 }
 0x1ee   :  { %v279_v19 = vmul.f32 %v273_v10, %v493_v13  ;;  %v280_v20 = vmul.f32 %v273_v10, %v496_v15  ;;  %v281_v49 = vmul.f32 %v273_v10, %v499_v18  ;;  %v282_v22 = vmul.f32 %v273_v10, %v509_v23 }
 0x1f1   :  { %v286_v17 = vpop.permute.xlu1 %285  ;;  %v291_v50 = vpop.permute.xlu0 %290 }
 0x1f2   :  { %v293_v51 = vadd.f32 %v286_v17, %v275_v11  ;;  %v294_v25 = vadd.f32 %v286_v17, %v276_v12  ;;  %v295_v55 = vadd.f32 %v286_v17, %v277_v14  ;;  %v296_v27 = vadd.f32 %v286_v17, %v278_v16 }
 0x1f3   :  { %v297_v21 = vadd.f32 %v291_v50, %v279_v19  ;;  %v298_v24 = vadd.f32 %v291_v50, %v280_v20  ;;  %v299_v26 = vadd.f32 %v291_v50, %v281_v49  ;;  %v300_v28 = vadd.f32 %v291_v50, %v282_v22 }
 0x1f4   :  { %301 = vst [vmem:[#allocation5] sm:$0xff] %v293_v51  ;;  %302 = vst [vmem:[#allocation5 + $0x8] sm:$0xff] %v294_v25 }
 0x1f5   :  { %303 = vst [vmem:[#allocation5 + $0x10] sm:$0xff] %v295_v55  ;;  %304 = vst [vmem:[#allocation5 + $0x18] sm:$0xff] %v296_v27 }
 0x1f6   :  { %305 = vst [vmem:[#allocation5 + $0x20] sm:$0xff] %v297_v21  ;;  %306 = vst [vmem:[#allocation5 + $0x28] sm:$0xff] %v298_v24 }
 0x1f7   :  { %307 = vst [vmem:[#allocation5 + $0x30] sm:$0xff] %v299_v26  ;;  %308 = vst [vmem:[#allocation5 + $0x38] sm:$0xff] %v300_v28 }
 0x1f8   :  { %386 = shalt.err (!%p383_p12)
}
 0x1f9   :  { %s387_s21 = scalar_lea.hbm %s562_s5, 1024 }
 0x1fa   :  { %p388_p13 = scmp.ne.s32.totalorder %s562_s5, %s387_s21  ;;  %p391_p0 = scmp.lt.u32.totalorder %s387_s21, %s562_s5 }
 0x1fc   :  { %p393_p1 = pnand %p391_p0, %p388_p13 }
 0x1fe   :  { %396 = shalt.err (!%p393_p1)
}
 0x1ff   :  { %320 = dma.vmem_to_hbm [thread:$0]  %s315_s18, 1024, %s562_s5, [#allocation4], %s402_s28, %s402_s28, %s403_s29  }
 0x200   :  { %399 = dma.done.wait [#allocation4], 1024  }
 0x201   :  { %400 = vsyncadd [#allocation4], 4294966272 }
 0x202   :  { %324 = vsyncpa [#allocation3], 1 }
 0x203   :  { %325 = vsyncpa [#allocation4], 1 }

</bundles_post_ra>
